<compile_context>
chip_gen: v7x
topology: tpu7x:2x2x1
jax: 0.10.0
libtpu: 0.0.40
codegen_flags: <defaults>
</compile_context>

<pallas_src>
import functools

import jax
import jax.numpy as jnp
from jax.experimental import pallas as pl
from jax.experimental.pallas import tpu as pltpu

N_EMBD = 128
HIDDEN = 4 * N_EMBD
DROPOUT_P = 0.5


def _make_ffn_kernel(tm: int, n_cols: int, dropout_p: float, training: bool):
    keep_prob = 1.0 - dropout_p
    apply_dropout = training and dropout_p > 0.0
    # 23-bit threshold (signed-compare friendly, no uint32 overflow at p -> 0).
    threshold = int(min(round(keep_prob * (1 << 23)), 1 << 23))
    inv_keep = (1.0 / keep_prob) if keep_prob > 0.0 else 0.0

    def ffn_kernel(seed_ref, x_ref, w1_ref, b1_ref, w2_ref, b2_ref, o_ref):
        # bf16 operands on the MXU, f32 accumulation.
        h = jnp.dot(x_ref[...], w1_ref[...], preferred_element_type=jnp.float32)
        h = jnp.maximum(h + b1_ref[...], 0.0)
        y = jnp.dot(h.astype(jnp.bfloat16), w2_ref[...],
                    preferred_element_type=jnp.float32)
        y = y + b2_ref[...]

        if apply_dropout:
            # Counter-based hash RNG keyed on (seed, global element index):
            # each M-tile gets an independent mask (program_id folded in via
            # the global row offset) and the result is tiling-invariant.
            # TODO(synk): RNG stream differs from torch.nn.Dropout's.
            row_off = (pl.program_id(0) * tm).astype(jnp.uint32)
            rows = jax.lax.broadcasted_iota(jnp.int32, y.shape, 0).astype(jnp.uint32)
            cols = jax.lax.broadcasted_iota(jnp.int32, y.shape, 1).astype(jnp.uint32)
            idx = (rows + row_off) * jnp.uint32(n_cols) + cols
            bits = idx ^ (seed_ref[0].astype(jnp.uint32) * jnp.uint32(0x9E3779B9))
            bits = (bits ^ (bits >> 16)) * jnp.uint32(0x7FEB352D)
            bits = (bits ^ (bits >> 15)) * jnp.uint32(0x846CA68B)
            bits = bits ^ (bits >> 16)
            r = (bits >> 9).astype(jnp.int32)          # 23 uniform bits, >= 0
            keep = r < jnp.int32(threshold)
            y = jnp.where(keep, y * jnp.float32(inv_keep), 0.0)

        o_ref[...] = y.astype(o_ref.dtype)

    return ffn_kernel


def _pick_tile_m(m: int) -> int:
    if m >= 512:
        return 512                      # ~2.5 MiB/step live; safe on 64 MiB v7x
    return max(8, -(-m // 8) * 8)       # small M: one tile, rounded to sublane


@functools.partial(jax.jit, static_argnames=("dropout_p", "training"))
def feed_forward(x, w1, b1, w2, b2, seed, *, dropout_p=DROPOUT_P, training=True):
    """x: (B, T, C); w1: (C, H); b1: (H,); w2: (H, C); b2: (C,)."""
    B, T, C = x.shape
    H = w1.shape[1]
    M = B * T
    tm = _pick_tile_m(M)
    m_pad = pl.cdiv(M, tm) * tm

    # bf16 operands for the MXU; padding handles ragged tails of the M axis.
    x2 = x.reshape(M, C).astype(jnp.bfloat16)
    if m_pad != M:
        x2 = jnp.pad(x2, ((0, m_pad - M), (0, 0)))
    w1b = w1.astype(jnp.bfloat16)
    w2b = w2.astype(jnp.bfloat16)
    b1_2d = b1.reshape(1, H).astype(jnp.float32)
    b2_2d = b2.reshape(1, C).astype(jnp.float32)
    seed_arr = jnp.asarray(seed, dtype=jnp.int32).reshape((1,))

    kernel = _make_ffn_kernel(tm, C, dropout_p, training)

    out2 = pl.pallas_call(
        kernel,
        out_shape=jax.ShapeDtypeStruct((m_pad, C), x.dtype),
        grid_spec=pltpu.PrefetchScalarGridSpec(
            num_scalar_prefetch=1,               # seed lands in SMEM
            grid=(m_pad // tm,),                 # tile the token axis
            in_specs=[
                pl.BlockSpec((tm, C), lambda i, s: (i, 0)),   # x tile (streamed)
                pl.BlockSpec((C, H), lambda i, s: (0, 0)),    # w1 (VMEM-resident)
                pl.BlockSpec((1, H), lambda i, s: (0, 0)),    # b1
                pl.BlockSpec((H, C), lambda i, s: (0, 0)),    # w2 (VMEM-resident)
                pl.BlockSpec((1, C), lambda i, s: (0, 0)),    # b2
            ],
            out_specs=pl.BlockSpec((tm, C), lambda i, s: (i, 0)),
        ),
        compiler_params=pltpu.CompilerParams(
            dimension_semantics=("parallel",)),   # shard M-tiles across v7x TCs
    )(seed_arr, x2, w1b, b1_2d, w2b, b2_2d)

    return out2[:M].reshape(B, T, C)


def init_params(key, n_embd=N_EMBD, hidden=HIDDEN, dtype=jnp.float32):
    """Deterministic torch-style init: U(-1/sqrt(fan_in), 1/sqrt(fan_in))."""
    k1, k2, k3, k4 = jax.random.split(key, 4)
    bound1 = 1.0 / (n_embd ** 0.5)
    bound2 = 1.0 / (hidden ** 0.5)
    # Stored as (in, out) so the kernel computes x @ W + b directly.
    w1 = jax.random.uniform(k1, (n_embd, hidden), dtype, -bound1, bound1)
    b1 = jax.random.uniform(k2, (hidden,), dtype, -bound1, bound1)
    w2 = jax.random.uniform(k3, (hidden, n_embd), dtype, -bound2, bound2)
    b2 = jax.random.uniform(k4, (n_embd,), dtype, -bound2, bound2)
    return w1, b1, w2, b2


if __name__ == "__main__":
    key = jax.random.PRNGKey(0)
    kx, kp = jax.random.split(key)

    B, T, C = 2, 8, N_EMBD
    x = jax.random.normal(kx, (B, T, C), dtype=jnp.float32)
    w1, b1, w2, b2 = init_params(kp)

    # Eval-mode (dropout off) check against a matching-precision JAX reference.
    y_eval = feed_forward(x, w1, b1, w2, b2, seed=0, training=False)
    xb = x.reshape(-1, C).astype(jnp.bfloat16)
    h_ref = jnp.maximum(
        jnp.dot(xb, w1.astype(jnp.bfloat16),
                preferred_element_type=jnp.float32) + b1, 0.0)
    ref = jnp.dot(h_ref.astype(jnp.bfloat16), w2.astype(jnp.bfloat16),
                  preferred_element_type=jnp.float32) + b2
    assert jnp.allclose(y_eval.reshape(-1, C), ref, atol=5e-2, rtol=5e-2), \
        "eval-mode mismatch vs reference"

    # Training-mode forward (inverted dropout applied inside the kernel).
    y_train = feed_forward(x, w1, b1, w2, b2, seed=1234, training=True)
    jax.block_until_ready(y_train)

    print("KERNEL_OK")
</pallas_src>

<mosaic_0001>
module attributes {stable_mosaic.version = 11 : i64} {
  func.func @ffn_kernel(%arg0: i32, %arg1: memref<1xi32, #tpu.memory_space<smem>>, %arg2: memref<16x128xbf16, #tpu.memory_space<vmem>>, %arg3: memref<128x512xbf16, #tpu.memory_space<vmem>>, %arg4: memref<1x512xf32, #tpu.memory_space<vmem>>, %arg5: memref<512x128xbf16, #tpu.memory_space<vmem>>, %arg6: memref<1x128xf32, #tpu.memory_space<vmem>>, %arg7: memref<16x128xf32, #tpu.memory_space<vmem>>) attributes {dimension_semantics = [#tpu.dimension_semantics<parallel>], iteration_bounds = array<i64: 1>, scalar_prefetch = 1 : i64, scratch_operands = 0 : i64, tpu.core_type = #tpu.core_type<tc>, window_params = [{transform_indices = @transform_0, window_bounds = array<i64: 16, 128>}, {pipeline_mode = #tpu.pipeline_mode<synchronous>, transform_indices = @transform_1, window_bounds = array<i64: 128, 512>}, {pipeline_mode = #tpu.pipeline_mode<synchronous>, transform_indices = @transform_2, window_bounds = array<i64: 1, 512>}, {pipeline_mode = #tpu.pipeline_mode<synchronous>, transform_indices = @transform_3, window_bounds = array<i64: 512, 128>}, {pipeline_mode = #tpu.pipeline_mode<synchronous>, transform_indices = @transform_4, window_bounds = array<i64: 1, 128>}, {transform_indices = @transform_5, window_bounds = array<i64: 16, 128>}]} {
    %c0 = arith.constant 0 : index
    %c0_0 = arith.constant 0 : index
    %0 = vector.load %arg2[%c0, %c0_0] : memref<16x128xbf16, #tpu.memory_space<vmem>>, vector<16x128xbf16>
    %c0_1 = arith.constant 0 : index
    %c0_2 = arith.constant 0 : index
    %1 = vector.load %arg3[%c0_1, %c0_2] : memref<128x512xbf16, #tpu.memory_space<vmem>>, vector<128x512xbf16>
    %cst = arith.constant dense<0.000000e+00> : vector<16x512xf32>
    %2 = tpu.matmul %0, %1, %cst {dimension_numbers = #tpu.dot_dimension_numbers<[1], [0], [0], [1], [0, 0, 1, 1], [], []>} : vector<16x128xbf16>, vector<128x512xbf16>, vector<16x512xf32> -> vector<16x512xf32>
    %c0_3 = arith.constant 0 : index
    %c0_4 = arith.constant 0 : index
    %3 = vector.load %arg4[%c0_3, %c0_4] : memref<1x512xf32, #tpu.memory_space<vmem>>, vector<1x512xf32>
    %4 = vector.broadcast %3 : vector<1x512xf32> to vector<16x512xf32>
    %5 = arith.addf %2, %4 : vector<16x512xf32>
    %cst_5 = arith.constant 0.000000e+00 : f32
    %6 = vector.broadcast %cst_5 : f32 to vector<16x512xf32>
    %7 = arith.maximumf %5, %6 : vector<16x512xf32>
    %8 = arith.truncf %7 : vector<16x512xf32> to vector<16x512xbf16>
    %c0_6 = arith.constant 0 : index
    %c0_7 = arith.constant 0 : index
    %9 = vector.load %arg5[%c0_6, %c0_7] : memref<512x128xbf16, #tpu.memory_space<vmem>>, vector<512x128xbf16>
    %cst_8 = arith.constant dense<0.000000e+00> : vector<16x128xf32>
    %10 = tpu.matmul %8, %9, %cst_8 {dimension_numbers = #tpu.dot_dimension_numbers<[1], [0], [0], [1], [0, 0, 1, 1], [], []>} : vector<16x512xbf16>, vector<512x128xbf16>, vector<16x128xf32> -> vector<16x128xf32>
    %c0_9 = arith.constant 0 : index
    %c0_10 = arith.constant 0 : index
    %11 = vector.load %arg6[%c0_9, %c0_10] : memref<1x128xf32, #tpu.memory_space<vmem>>, vector<1x128xf32>
    %12 = vector.broadcast %11 : vector<1x128xf32> to vector<16x128xf32>
    %13 = arith.addf %10, %12 : vector<16x128xf32>
    %c0_11 = arith.constant 0 : index
    %c0_12 = arith.constant 0 : index
    %14 = vector.load %arg7[%c0_11, %c0_12] : memref<16x128xf32, #tpu.memory_space<vmem>>, vector<16x128xf32>
    tpu.vector_store %arg7[%c0_11, %c0_12], %13 {strides = array<i32>} : memref<16x128xf32, #tpu.memory_space<vmem>>, vector<16x128xf32>,
    return
  }
  func.func @transform_0(%arg0: i32, %arg1: memref<1xi32, #tpu.memory_space<smem>>) -> (i32, i32) {
    %c0_i32 = arith.constant 0 : i32
    %c0_i32_0 = arith.constant 0 : i32
    return %arg0, %c0_i32 : i32, i32
  }
  func.func @transform_1(%arg0: i32, %arg1: memref<1xi32, #tpu.memory_space<smem>>) -> (i32, i32) {
    %c0_i32 = arith.constant 0 : i32
    %c0_i32_0 = arith.constant 0 : i32
    %c0_i32_1 = arith.constant 0 : i32
    return %c0_i32, %c0_i32_0 : i32, i32
  }
  func.func @transform_2(%arg0: i32, %arg1: memref<1xi32, #tpu.memory_space<smem>>) -> (i32, i32) {
    %c0_i32 = arith.constant 0 : i32
    %c0_i32_0 = arith.constant 0 : i32
    %c0_i32_1 = arith.constant 0 : i32
    return %c0_i32, %c0_i32_0 : i32, i32
  }
  func.func @transform_3(%arg0: i32, %arg1: memref<1xi32, #tpu.memory_space<smem>>) -> (i32, i32) {
    %c0_i32 = arith.constant 0 : i32
    %c0_i32_0 = arith.constant 0 : i32
    %c0_i32_1 = arith.constant 0 : i32
    return %c0_i32, %c0_i32_0 : i32, i32
  }
  func.func @transform_4(%arg0: i32, %arg1: memref<1xi32, #tpu.memory_space<smem>>) -> (i32, i32) {
    %c0_i32 = arith.constant 0 : i32
    %c0_i32_0 = arith.constant 0 : i32
    %c0_i32_1 = arith.constant 0 : i32
    return %c0_i32, %c0_i32_0 : i32, i32
  }
  func.func @transform_5(%arg0: i32, %arg1: memref<1xi32, #tpu.memory_space<smem>>) -> (i32, i32) {
    %c0_i32 = arith.constant 0 : i32
    %c0_i32_0 = arith.constant 0 : i32
    return %arg0, %c0_i32 : i32, i32
  }
}

</mosaic_0001>

<bundles_post_ra>
// kernel: feed_forward.1
= control target key start
LH: loop header
LB: loop body
LE: loop exit
PB: predicated region body
PF: predicated region fallthrough
CT: control target
= control target key end

     0   :  { %v926_v2 = vmov 0   ;;  %s1178_s0 = inlined_call_operand.<no memory space> [shape: s32[1], index: 0, kind: input, shape index: {}]   ;;  %s1179_s1 = inlined_call_operand.vmem [shape: bf16[16,128], index: 1, kind: input, shape index: {}]   ;;  %s1180_s2 = inlined_call_operand.vmem [shape: bf16[128,512], index: 2, kind: input, shape index: {}]   ;;  %s1181_s3 = inlined_call_operand.vmem [shape: f32[1,512], index: 3, kind: input, shape index: {}]   ;;  %s1182_s4 = inlined_call_operand.vmem [shape: bf16[512,128], index: 4, kind: input, shape index: {}]   ;;  %s1183_s5 = inlined_call_operand.vmem [shape: f32[1,128], index: 5, kind: input, shape index: {}]   ;;  %s1184_s6 = inlined_call_operand.hbm [shape: f32[16,128], index: 6, kind: output, shape index: {}]  }
   0x1   :  { %v821_v0 = vld [vmem:[%s1180_s2 + $0x4] ss:$16 sps:$4 sm:$0xff]   ;;  %v823_v1 = vld [vmem:[%s1180_s2 + $0xc] ss:$16 sps:$4 sm:$0xff]   ;;  %278 = vmatprep.mubr.bf16.mxu0 %v926_v2  ;;  %321 = vmatprep.mubr.bf16.mxu1 %v926_v2  ;;  %v825_v3 = vld [vmem:[%s1180_s2] ss:$16 sps:$4 sm:$0xff]  }
   0x2   :  { %246 = vmatprep.subr.bf16.mxu0 %v821_v0  ;;  %v826_v4 = vld [vmem:[%s1180_s2 + $0x8] ss:$16 sps:$4 sm:$0xff]   ;;  %289 = vmatprep.subr.bf16.mxu1 %v823_v1  ;;  %v827_v5 = vld [vmem:[%s1180_s2 + $0x24] ss:$16 sps:$4 sm:$0xff]   ;;  %v829_v6 = vld [vmem:[%s1180_s2 + $0x2c] ss:$16 sps:$4 sm:$0xff]  }
   0x3   :  { %247 = vmatpush1.bf16.msra.mxu0 %v825_v3  ;;  %290 = vmatpush1.bf16.msra.mxu1 %v826_v4  ;;  %v831_v7 = vld [vmem:[%s1180_s2 + $0x20] ss:$16 sps:$4 sm:$0xff]   ;;  %v832_v8 = vld [vmem:[%s1180_s2 + $0x28] ss:$16 sps:$4 sm:$0xff]   ;;  %v833_v9 = vld [vmem:[%s1180_s2 + $0x44] ss:$16 sps:$4 sm:$0xff]  }
   0x4   :  { %248 = vmatprep.subr.bf16.mxu0 %v827_v5  ;;  %291 = vmatprep.subr.bf16.mxu1 %v829_v6  ;;  %v835_v10 = vld [vmem:[%s1180_s2 + $0x4c] ss:$16 sps:$4 sm:$0xff]   ;;  %v837_v11 = vld [vmem:[%s1180_s2 + $0x40] ss:$16 sps:$4 sm:$0xff]   ;;  %v838_v12 = vld [vmem:[%s1180_s2 + $0x48] ss:$16 sps:$4 sm:$0xff]  }
   0x5   :  { %v839_v13 = vld [vmem:[%s1180_s2 + $0x64] ss:$16 sps:$4 sm:$0xff]   ;;  %v841_v14 = vld [vmem:[%s1180_s2 + $0x6c] ss:$16 sps:$4 sm:$0xff]   ;;  %v843_v15 = vld [vmem:[%s1180_s2 + $0x60] ss:$16 sps:$4 sm:$0xff]  }
   0x6   :  { %v844_v16 = vld [vmem:[%s1180_s2 + $0x68] ss:$16 sps:$4 sm:$0xff]   ;;  %v845_v17 = vld [vmem:[%s1180_s2 + $0x84] ss:$16 sps:$4 sm:$0xff]   ;;  %v847_v18 = vld [vmem:[%s1180_s2 + $0x8c] ss:$16 sps:$4 sm:$0xff]  }
   0x7   :  { %249 = vmatpush1.bf16.msra.mxu0 %v831_v7  ;;  %292 = vmatpush1.bf16.msra.mxu1 %v832_v8  ;;  %v849_v19 = vld [vmem:[%s1180_s2 + $0x80] ss:$16 sps:$4 sm:$0xff]   ;;  %v850_v20 = vld [vmem:[%s1180_s2 + $0x88] ss:$16 sps:$4 sm:$0xff]   ;;  %v851_v21 = vld [vmem:[%s1180_s2 + $0xa4] ss:$16 sps:$4 sm:$0xff]  }
   0x8   :  { %250 = vmatprep.subr.bf16.mxu0 %v833_v9  ;;  %293 = vmatprep.subr.bf16.mxu1 %v835_v10  ;;  %v853_v22 = vld [vmem:[%s1180_s2 + $0xac] ss:$16 sps:$4 sm:$0xff]   ;;  %v855_v23 = vld [vmem:[%s1180_s2 + $0xa0] ss:$16 sps:$4 sm:$0xff]   ;;  %v856_v24 = vld [vmem:[%s1180_s2 + $0xa8] ss:$16 sps:$4 sm:$0xff]  }
   0x9   :  { %v857_v25 = vld [vmem:[%s1180_s2 + $0xc4] ss:$16 sps:$4 sm:$0xff]   ;;  %v859_v26 = vld [vmem:[%s1180_s2 + $0xcc] ss:$16 sps:$4 sm:$0xff]   ;;  %v861_v27 = vld [vmem:[%s1180_s2 + $0xc0] ss:$16 sps:$4 sm:$0xff]  }
   0xa   :  { %v862_v28 = vld [vmem:[%s1180_s2 + $0xc8] ss:$16 sps:$4 sm:$0xff]   ;;  %v863_v29 = vld [vmem:[%s1180_s2 + $0xe4] ss:$16 sps:$4 sm:$0xff]   ;;  %v865_v30 = vld [vmem:[%s1180_s2 + $0xec] ss:$16 sps:$4 sm:$0xff]  }
   0xb   :  { %251 = vmatpush1.bf16.msra.mxu0 %v837_v11  ;;  %294 = vmatpush1.bf16.msra.mxu1 %v838_v12  ;;  %v867_v31 = vld [vmem:[%s1180_s2 + $0xe0] ss:$16 sps:$4 sm:$0xff]   ;;  %v868_v32 = vld [vmem:[%s1180_s2 + $0xe8] ss:$16 sps:$4 sm:$0xff]  }
   0xc   :  { %252 = vmatprep.subr.bf16.mxu0 %v839_v13  ;;  %295 = vmatprep.subr.bf16.mxu1 %v841_v14  ;;  %v870_v33 = vld [vmem:[%s1182_s4 + $0x40] sm:$0xff]   ;;  %v874_v38 = vld [vmem:[%s1182_s4 + $0x48] sm:$0xff]   ;;  %v878_v42 = vld [vmem:[%s1182_s4 + $0x50] sm:$0xff]  }
   0xd   :  { %v869_v34 = vld [vmem:[%s1179_s1] sm:$0xff]   ;;  %v875_v39 = vld [vmem:[%s1182_s4 + $0xc8] sm:$0xff]   ;;  %v879_v43 = vld [vmem:[%s1182_s4 + $0xd0] sm:$0xff]  }
   0xe   :  { %v871_v35 = vld [vmem:[%s1182_s4 + $0xc0] sm:$0xff]   ;;  %v876_v40 = vld [vmem:[%s1182_s4 + $0x8] sm:$0xff]   ;;  %v880_v44 = vld [vmem:[%s1182_s4 + $0x10] sm:$0xff]  }
   0xf   :  { %253 = vmatpush1.bf16.msra.mxu0 %v843_v15  ;;  %296 = vmatpush1.bf16.msra.mxu1 %v844_v16  ;;  %v872_v36 = vld [vmem:[%s1182_s4] sm:$0xff]   ;;  %v877_v41 = vld [vmem:[%s1182_s4 + $0x88] sm:$0xff]   ;;  %v881_v45 = vld [vmem:[%s1182_s4 + $0x90] sm:$0xff]  }
  0x10   :  { %254 = vmatprep.subr.bf16.mxu0 %v845_v17  ;;  %297 = vmatprep.subr.bf16.mxu1 %v847_v18  ;;  %v873_v37 = vld [vmem:[%s1182_s4 + $0x80] sm:$0xff]   ;;  %v882_v46 = vld [vmem:[%s1182_s4 + $0x58] sm:$0xff]   ;;  %v890_v54 = vld [vmem:[%s1182_s4 + $0x68] sm:$0xff]  }
  0x11   :  { %v883_v47 = vld [vmem:[%s1182_s4 + $0xd8] sm:$0xff]   ;;  %v886_v50 = vld [vmem:[%s1182_s4 + $0x60] sm:$0xff]   ;;  %v891_v55 = vld [vmem:[%s1182_s4 + $0xe8] sm:$0xff]  }
  0x12   :  { %v884_v48 = vld [vmem:[%s1182_s4 + $0x18] sm:$0xff]   ;;  %v887_v51 = vld [vmem:[%s1182_s4 + $0xe0] sm:$0xff]  }
  0x13   :  { %255 = vmatpush1.bf16.msra.mxu0 %v849_v19  ;;  %298 = vmatpush1.bf16.msra.mxu1 %v850_v20  ;;  %v885_v49 = vld [vmem:[%s1182_s4 + $0x98] sm:$0xff]   ;;  %v888_v52 = vld [vmem:[%s1182_s4 + $0x20] sm:$0xff]  }
  0x14   :  { %256 = vmatprep.subr.bf16.mxu0 %v851_v21  ;;  %299 = vmatprep.subr.bf16.mxu1 %v853_v22  ;;  %v889_v53 = vld [vmem:[%s1182_s4 + $0xa0] sm:$0xff]  }
  0x17   :  { %257 = vmatpush1.bf16.msra.mxu0 %v855_v23  ;;  %300 = vmatpush1.bf16.msra.mxu1 %v856_v24 }
  0x18   :  { %258 = vmatprep.subr.bf16.mxu0 %v857_v25  ;;  %301 = vmatprep.subr.bf16.mxu1 %v859_v26 }
  0x1b   :  { %259 = vmatpush1.bf16.msra.mxu0 %v861_v27  ;;  %302 = vmatpush1.bf16.msra.mxu1 %v862_v28 }
  0x1c   :  { %260 = vmatprep.subr.bf16.mxu0 %v863_v29  ;;  %303 = vmatprep.subr.bf16.mxu1 %v865_v30 }
  0x1f   :  { %261 = vmatpush1.bf16.msra.mxu0 %v867_v31  ;;  %304 = vmatpush1.bf16.msra.mxu1 %v868_v32 }
  0x20   :  { %773 = vmatprep.subr.bf16.mxu0 %v870_v33  ;;  %795 = vmatprep.subr.bf16.mxu1 %v871_v35 }
  0x22   :  { %279 = vmatmul.mubr.bf16.vlgmr.msra.gmra.mrb[0].mxu0 %v869_v34  ;;  %322 = vmatmul.mubr.bf16.vlgmr.msra.gmra.mrb[0].mxu1 %v869_v34 }
  0x23   :  { %774 = vmatpush3.bf16.msra.mxu0 %v872_v36  ;;  %796 = vmatpush3.bf16.msra.mxu1 %v873_v37 }
  0x24   :  { %775 = vmatprep.subr.bf16.mxu0 %v874_v38  ;;  %797 = vmatprep.subr.bf16.mxu1 %v875_v39 }
  0x27   :  { %776 = vmatpush3.bf16.msra.mxu0 %v876_v40  ;;  %798 = vmatpush3.bf16.msra.mxu1 %v877_v41 }
  0x28   :  { %777 = vmatprep.subr.bf16.mxu0 %v878_v42  ;;  %799 = vmatprep.subr.bf16.mxu1 %v879_v43 }
  0x2b   :  { %778 = vmatpush3.bf16.msra.mxu0 %v880_v44  ;;  %800 = vmatpush3.bf16.msra.mxu1 %v881_v45 }
  0x2c   :  { %779 = vmatprep.subr.bf16.mxu0 %v882_v46  ;;  %801 = vmatprep.subr.bf16.mxu1 %v883_v47 }
  0x2f   :  { %780 = vmatpush3.bf16.msra.mxu0 %v884_v48  ;;  %802 = vmatpush3.bf16.msra.mxu1 %v885_v49 }
  0x30   :  { %781 = vmatprep.subr.bf16.mxu0 %v886_v50  ;;  %803 = vmatprep.subr.bf16.mxu1 %v887_v51 }
  0x31   :  { %12 = vsyncpa [#allocation5], 0  ;;  %v892_v56 = vld [vmem:[%s1182_s4 + $0x28] sm:$0xff]   ;;  %v894_v58 = vld [vmem:[%s1182_s4 + $0x70] sm:$0xff]   ;;  %v60_v2 = vlaneseq  ;;  %s927_s0 = smov [#allocation4]  }
  0x32   :  { %v893_v57 = vld [vmem:[%s1182_s4 + $0xa8] sm:$0xff]   ;;  %v895_v59 = vld [vmem:[%s1182_s4 + $0xf0] sm:$0xff]   ;;  %v898_v62 = vld [vmem:[%s1182_s4 + $0x78] sm:$0xff]   ;;  %s696_s22 = sshll.u32 %s927_s0, 4  ;;  %s697_s22 = int_to_ptr.vmem [resolvable:$true] %s696_s22 }
  0x33   :  { %782 = vmatpush3.bf16.msra.mxu0 %v888_v52  ;;  %804 = vmatpush3.bf16.msra.mxu1 %v889_v53  ;;  %v896_v60 = vld [vmem:[%s1182_s4 + $0x30] sm:$0xff]   ;;  %v899_v63 = vld [vmem:[%s1182_s4 + $0xf8] sm:$0xff]   ;;  %v61_v3 = vshrl.u32 %v60_v2, 7  ;;  %v58_v6 = vld [vmem:[%s1181_s3] sm:$0xf]  ;;  %p907_p1 = scmp.lt.s32.totalorder %s697_s22, %s697_s22 }
  0x34   :  { %783 = vmatprep.subr.bf16.mxu0 %v890_v54  ;;  %805 = vmatprep.subr.bf16.mxu1 %v891_v55  ;;  %v897_v61 = vld [vmem:[%s1182_s4 + $0xb0] sm:$0xff]   ;;  %v900_v0 = vld [vmem:[%s1182_s4 + $0x38] sm:$0xff]   ;;  %v740_v43 = vld [vmem:[%s1183_s5] ss:$0 sm:$0xff]  ;;  %s902_s5 = scalar_lea.vmem %s697_s22, 256 }
  0x35   :  { %v901_v1 = vld [vmem:[%s1182_s4 + $0xb8] sm:$0xff]   ;;  %v62_v4 = vsub.s32 0, %v61_v3  ;;  %v70_v5 = vsub.s32 2, %v61_v3  ;;  %v66_v7 = vsub.s32 1, %v61_v3  ;;  %v74_v8 = vsub.s32 3, %v61_v3  ;;  %p903_p0 = scmp.ne.s32.totalorder %s697_s22, %s902_s5  ;;  %p908_p2 = scmp.lt.s32.totalorder %s902_s5, %s902_s5 }
  0x37   :  { %784 = vmatpush3.bf16.msra.mxu0 %v892_v56  ;;  %806 = vmatpush3.bf16.msra.mxu1 %v893_v57  ;;  %v63_v9 = vrot.slane %v58_v6, %v62_v4  ;;  %v71_v10 = vrot.slane %v58_v6, %v70_v5  ;;  %v67_v11 = vrot.slane %v58_v6, %v66_v7  ;;  %p909_p3 = por %p908_p2, %p907_p1 }
  0x38   :  { %785 = vmatprep.subr.bf16.mxu0 %v894_v58  ;;  %807 = vmatprep.subr.bf16.mxu1 %v895_v59  ;;  %v75_v12 = vrot.slane %v58_v6, %v74_v8 }
  0x39   :  { %p910_p4 = pnand %p909_p3, %p903_p0 }
  0x3b   :  { %786 = vmatpush3.bf16.msra.mxu0 %v896_v60  ;;  %808 = vmatpush3.bf16.msra.mxu1 %v897_v61 }
  0x3c   :  { %787 = vmatprep.subr.bf16.mxu0 %v898_v62  ;;  %809 = vmatprep.subr.bf16.mxu1 %v899_v63 }
  0x3f   :  { %788 = vmatpush3.bf16.msra.mxu0 %v900_v0  ;;  %810 = vmatpush3.bf16.msra.mxu1 %v901_v1 }
  0xf5   :  { %v280_v13 = vpop.f32.mrb[0].mxu0  ;;  %v323_v14 = vpop.f32.mrb[0].mxu1 }
  0xf6   :  { %v281_v15 = vadd.f32 %v280_v13, %v63_v9  ;;  %v324_v16 = vadd.f32 %v323_v14, %v71_v10  ;;  %v282_v17 = vpop.f32.mrb[1].mxu0  ;;  %v325_v18 = vpop.f32.mrb[1].mxu1 }
  0xf7   :  { %v283_v19 = vadd.f32 %v282_v17, %v67_v11  ;;  %v326_v20 = vadd.f32 %v325_v18, %v75_v12  ;;  %v284_v21 = vpop.f32.mrb[2].mxu0  ;;  %v327_v22 = vpop.f32.mrb[2].mxu1 }
  0xf8   :  { %v334_v23 = vmax.f32 %v324_v16, 0.0  ;;  %v285_v24 = vadd.f32 %v284_v21, %v63_v9  ;;  %v328_v25 = vadd.f32 %v327_v22, %v71_v10  ;;  %v286_v26 = vpop.f32.mrb[3].mxu0  ;;  %v329_v27 = vpop.f32.mrb[3].mxu1  ;;  %v332_v31 = vmax.f32 %v281_v15, 0.0 }
  0xf9   :  { %v335_v28 = vmax.f32 %v326_v20, 0.0  ;;  %v287_v29 = vadd.f32 %v286_v26, %v67_v11  ;;  %v330_v30 = vadd.f32 %v329_v27, %v75_v12  ;;  %v333_v34 = vmax.f32 %v283_v19, 0.0 }
  0xfa   :  { %v336_v32 = vmax.f32 %v285_v24, 0.0  ;;  %v338_v33 = vmax.f32 %v328_v25, 0.0 }
  0xfb   :  { %v337_v35 = vmax.f32 %v287_v29, 0.0  ;;  %v339_v36 = vmax.f32 %v330_v30, 0.0 }
  0xfc   :  { %v340_v37 = vpack.c.bf16 %v336_v32, %v332_v31  ;;  %v342_v38 = vpack.c.bf16 %v338_v33, %v334_v23 }
  0xfd   :  { %v341_v39 = vpack.c.bf16 %v337_v35, %v333_v34  ;;  %v343_v40 = vpack.c.bf16 %v339_v36, %v335_v28 }
  0xff   :  { %639 = vmatprep.mubr.bf16.mxu0 %v341_v39  ;;  %680 = vmatprep.mubr.bf16.mxu1 %v343_v40 }
 0x100   :  { %640 = vmatmul.mubr.bf16.vlgmr.msra.gmra.mrb[4].mxu0 %v340_v37  ;;  %681 = vmatmul.mubr.bf16.vlgmr.msra.gmra.mrb[4].mxu1 %v342_v38 }
 0x1d3   :  { %v789_v41 = vpop.f32.mrb[4].mxu0  ;;  %v811_v42 = vpop.f32.mrb[4].mxu1 }
 0x1d4   :  { %v790_v44 = vpop.f32.mrb[5].mxu0  ;;  %v812_v45 = vpop.f32.mrb[5].mxu1 }
 0x1d5   :  { %v791_v46 = vadd.f32 %v790_v44, %v789_v41  ;;  %v813_v47 = vadd.f32 %v812_v45, %v811_v42  ;;  %v792_v48 = vpop.f32.mrb[6].mxu0  ;;  %v814_v49 = vpop.f32.mrb[6].mxu1 }
 0x1d6   :  { %v793_v50 = vpop.f32.mrb[7].mxu0  ;;  %v815_v51 = vpop.f32.mrb[7].mxu1 }
 0x1d7   :  { %v642_v52 = vadd.f32 %v791_v46, %v740_v43  ;;  %v794_v53 = vadd.f32 %v793_v50, %v792_v48  ;;  %v816_v54 = vadd.f32 %v815_v51, %v814_v49 }
 0x1d9   :  { %v683_v55 = vadd.f32 %v813_v47, %v642_v52  ;;  %v645_v56 = vadd.f32 %v794_v53, %v740_v43 }
 0x1db   :  { %689 = vst [vmem:[#allocation4] sm:$0xff] %v683_v55  ;;  %v686_v57 = vadd.f32 %v816_v54, %v645_v56 }
 0x1dd   :  { %690 = vst [vmem:[#allocation4 + $0x8] sm:$0xff] %v686_v57 }
 0x1de   :  { %913 = shalt.err (!%p910_p4)
}
 0x1df   :  { %s914_s25 = scalar_lea.hbm %s1184_s6, 256 }
 0x1e0   :  { %p915_p5 = scmp.ne.s32.totalorder %s1184_s6, %s914_s25  ;;  %p918_p6 = scmp.lt.u32.totalorder %s914_s25, %s1184_s6 }
 0x1e2   :  { %p920_p7 = pnand %p918_p6, %p915_p5 }
 0x1e4   :  { %923 = shalt.err (!%p920_p7)
}
 0x1e5   :  { %s928_s30 = smov 128   ;;  %s929_s7 = smov 8  }
 0x1e6   :  { %702 = dma.vmem_to_hbm [thread:$0]  %s697_s22, 256, %s1184_s6, [#allocation5], %s928_s30, %s928_s30, %s929_s7  }
 0x1e7   :  { %924 = dma.done.wait [#allocation5], 256  }
 0x1e8   :  { %925 = vsyncadd [#allocation5], 4294967040 }
 0x1e9   :  { %706 = vsyncpa [#allocation5], 1 }

</bundles_post_ra>
